<compile_context>
chip_gen: v6e
topology: v6e:2x2x1
jax: 0.10.0
libtpu: 0.0.40
codegen_flags: <defaults>
</compile_context>

<pallas_src>
import jax
import jax.numpy as jnp
from jax.experimental import pallas as pl
from jax.experimental.pallas import tpu as pltpu


_LANE = 128
_SUBLANE = 8
_NEG_BIG = -1e30  # effectively -inf for padded classes, without inf arithmetic


def _round_up(x, m):
    return (x + m - 1) // m * m


def _vmem_capacity_bytes():
    try:
        return int(pltpu.get_tpu_info().vmem_capacity_bytes)
    except Exception:
        return 64 * 1024 * 1024  # conservative fallback (v7x per-TC VMEM)


def _batch_tile_bytes(tb, in_pad, cls_pad, in_bytes):
    # x block (double-buffered) + out block (double-buffered) + f32 logits scratch.
    return 2 * tb * in_pad * in_bytes + 2 * tb * cls_pad * 4 + tb * cls_pad * 4


def _weight_tile_bytes(tn, in_pad, cls_pad, w_bytes, w1_buffers):
    # W1 tile stream + W2 tile stream + bias tiles (f32).
    return (w1_buffers * in_pad * tn * w_bytes
            + 2 * tn * cls_pad * w_bytes
            + 2 * tn * 4 + 2 * cls_pad * 4)


def _fused_mlp_softmax_kernel(x_ref, w1_ref, b1_ref, w2_ref, b2_ref, out_ref, acc_ref):
    # Grid: (batch_tiles, hidden_tiles); hidden is a reduction over logits.
    h_idx = pl.program_id(1)

    @pl.when(h_idx == 0)
    def _init():
        # Start the logits accumulator from the classifier bias
        # (padded classes carry a huge negative bias -> softmax prob 0;
        #  safe because their W2 columns are exactly zero).
        acc_ref[...] = jnp.broadcast_to(b2_ref[...], acc_ref.shape)

    # Hidden tile: (TB, TN) = relu(x @ W1_tile + b1_tile); f32 accumulate on MXU.
    h = jnp.dot(x_ref[...], w1_ref[...], preferred_element_type=jnp.float32)
    h = jnp.maximum(h + b1_ref[...], 0.0)

    # Partial logits contribution of this hidden tile.
    acc_ref[...] += jnp.dot(
        h.astype(w2_ref.dtype), w2_ref[...], preferred_element_type=jnp.float32
    )

    @pl.when(h_idx == pl.num_programs(1) - 1)
    def _finalize():
        logits = acc_ref[...]
        m = jnp.max(logits, axis=-1, keepdims=True)
        e = jnp.exp(logits - m)
        denom = jnp.sum(e, axis=-1, keepdims=True)
        # Exact divide: runs once per batch tile, cost negligible, rows sum to 1.
        out_ref[...] = (e / denom).astype(out_ref.dtype)


def prepare_wide_logreg_params(w1, b1, w2, b2, *, compute_dtype=jnp.bfloat16):
    """One-time weight preparation (do this ONCE, reuse across forward calls).

    w1: (in_feat, hidden)   b1: (hidden,) or (1, hidden)
    w2: (hidden, cls)       b2: (cls,)    or (1, cls)

    Casts to bf16, zero-pads to lane-aligned shapes, re-lays W1 tile-major so
    each weight-tile DMA is contiguous, and picks generation-aware tile sizes.
    """
    in_feat, hidden = w1.shape
    cls = w2.shape[1]
    in_pad = _round_up(in_feat, _LANE)
    hid_pad = _round_up(hidden, _LANE)
    cls_pad = _round_up(cls, _LANE)
    w_bytes = jnp.dtype(compute_dtype).itemsize

    capacity = _vmem_capacity_bytes()
    usable = (capacity * 3) // 4  # ~96 MiB on v5e/v6e (128 MiB), ~48 MiB on v7x (64 MiB)

    # Batch-tile cap: largest tb whose resident/double-buffered blocks take at
    # most half of the usable budget; the rest is reserved for the weight stream.
    # Bigger tb => the weight set is re-streamed fewer times for large batches.
    tb_cap = _SUBLANE
    for cand in (512, 256, 128, 64, 32, 16, 8):
        if _batch_tile_bytes(cand, in_pad, cls_pad, w_bytes) <= usable // 2:
            tb_cap = cand
            break

    # Hidden tile: largest lane-multiple dividing hid_pad that fits the
    # remaining VMEM with a double-buffered W1/W2 stream.
    remaining = usable - _batch_tile_bytes(tb_cap, in_pad, cls_pad, w_bytes)
    tn = _LANE
    for cand in (2048, 1024, 512, 256, 128):
        if hid_pad % cand == 0 and _weight_tile_bytes(cand, in_pad, cls_pad, w_bytes, 2) <= remaining:
            tn = cand
            break
    n_h = hid_pad // tn

    # Third W1 buffer hides DMA start latency when per-step compute is short;
    # only worth it with enough hidden tiles and spare VMEM.
    w1_buffers = 2
    if n_h >= 3 and _weight_tile_bytes(tn, in_pad, cls_pad, w_bytes, 3) <= remaining:
        w1_buffers = 3

    total_est = (_batch_tile_bytes(tb_cap, in_pad, cls_pad, w_bytes)
                 + _weight_tile_bytes(tn, in_pad, cls_pad, w_bytes, w1_buffers))
    vmem_limit = int(min(capacity - (16 << 20), max(2 * total_est, 32 << 20)))

    # ---- pad / cast / re-layout weights (once) ----
    if (in_feat, hidden) == (in_pad, hid_pad):
        w1p = w1.astype(compute_dtype)
    else:
        w1p = jnp.zeros((in_pad, hid_pad), compute_dtype).at[:in_feat, :hidden].set(
            w1.astype(compute_dtype))
    # Tile-major layout: (n_h, in_pad, tn) -> each W1 tile DMA is one contiguous block.
    w1t = w1p.reshape(in_pad, n_h, tn).transpose(1, 0, 2)

    b1p = jnp.zeros((1, hid_pad), jnp.float32).at[:, :hidden].set(
        b1.reshape(1, -1).astype(jnp.float32))

    if (hidden, cls) == (hid_pad, cls_pad):
        w2p = w2.astype(compute_dtype)
    else:
        w2p = jnp.zeros((hid_pad, cls_pad), compute_dtype).at[:hidden, :cls].set(
            w2.astype(compute_dtype))

    b2p = jnp.full((1, cls_pad), _NEG_BIG, jnp.float32).at[:, :cls].set(
        b2.reshape(1, -1).astype(jnp.float32))

    return dict(
        w1=w1t, b1=b1p, w2=w2p, b2=b2p,
        in_feat=in_feat, hidden=hidden, cls=cls,
        in_pad=in_pad, hid_pad=hid_pad, cls_pad=cls_pad,
        tn=tn, tb_cap=tb_cap, w1_buffers=w1_buffers,
        vmem_limit=vmem_limit, compute_dtype=compute_dtype,
    )


def wide_logistic_regression_relu_apply(x, params):
    """Fused forward with pre-prepared weights (see prepare_wide_logreg_params)."""
    compute_dtype = params["compute_dtype"]
    in_feat, cls = params["in_feat"], params["cls"]
    in_pad, hid_pad, cls_pad = params["in_pad"], params["hid_pad"], params["cls_pad"]
    tn, tb_cap, w1_buffers = params["tn"], params["tb_cap"], params["w1_buffers"]

    B = x.shape[0]
    x_flat = x.reshape(B, -1)
    assert x_flat.shape[1] == in_feat, "input feature size mismatch with prepared weights"

    b_req = _round_up(max(B, _SUBLANE), _SUBLANE)
    if b_req <= tb_cap:
        tb, b_pad = b_req, b_req
    else:
        tb = tb_cap
        b_pad = _round_up(b_req, tb)

    # Skip the x copy when it is already aligned and in compute dtype.
    if (B, in_feat) == (b_pad, in_pad) and x_flat.dtype == compute_dtype:
        xp = x_flat
    else:
        xp = jnp.zeros((b_pad, in_pad), compute_dtype).at[:B, :in_feat].set(
            x_flat.astype(compute_dtype))

    n_h = hid_pad // tn
    grid = (b_pad // tb, n_h)

    if w1_buffers > 2:
        w1_spec = pl.BlockSpec((None, in_pad, tn), lambda b, h: (h, 0, 0),
                               pipeline_mode=pl.Buffered(w1_buffers))
    else:
        w1_spec = pl.BlockSpec((None, in_pad, tn), lambda b, h: (h, 0, 0))

    out = pl.pallas_call(
        _fused_mlp_softmax_kernel,
        out_shape=jax.ShapeDtypeStruct((b_pad, cls_pad), jnp.float32),
        grid_spec=pltpu.PrefetchScalarGridSpec(
            num_scalar_prefetch=0,
            grid=grid,
            in_specs=[
                pl.BlockSpec((tb, in_pad), lambda b, h: (b, 0)),      # x
                w1_spec,                                              # W1 tile (tile-major)
                pl.BlockSpec((1, tn), lambda b, h: (0, h)),           # b1 tile
                pl.BlockSpec((tn, cls_pad), lambda b, h: (h, 0)),     # W2 tile (contiguous rows)
                pl.BlockSpec((1, cls_pad), lambda b, h: (0, 0)),      # b2
            ],
            out_specs=pl.BlockSpec((tb, cls_pad), lambda b, h: (b, 0)),
            scratch_shapes=[pltpu.VMEM((tb, cls_pad), jnp.float32)],  # logits accumulator
        ),
        compiler_params=pltpu.CompilerParams(
            # Batch axis "parallel": near-zero cost on v5e/v6e (single TC); on
            # v7x it shards batch tiles across cores (at the cost of duplicated
            # weight streaming when memory-bound; see TODO at top of file).
            dimension_semantics=("parallel", "arbitrary"),
            vmem_limit_bytes=params["vmem_limit"],
        ),
    )(xp, params["w1"], params["b1"], params["w2"], params["b2"])

    return out[:B, :cls]


def wide_logistic_regression_relu(x, w1, b1, w2, b2, *, compute_dtype=jnp.bfloat16):
    """Convenience one-shot path (prepares weights on every call).
    For repeated calls, call prepare_wide_logreg_params once and use *_apply."""
    params = prepare_wide_logreg_params(w1, b1, w2, b2, compute_dtype=compute_dtype)
    return wide_logistic_regression_relu_apply(x, params)


if __name__ == "__main__":
    key = jax.random.PRNGKey(0)
    kx, kp = jax.random.split(key)

    # Shapes implied by the module defaults: in_feat = 3*32*32, hidden=128, cls=10.
    B, C, H, W = 2, 3, 32, 32
    in_feat, hidden, cls = C * H * W, 128, 10
    x = jax.random.normal(kx, (B, C, H, W), jnp.float32)

    # Deterministic PyTorch-style (uniform +/- 1/sqrt(fan_in)) init,
    # weights stored transposed vs nn.Linear, i.e. (in, out).
    k1, k2, k3, k4 = jax.random.split(kp, 4)
    bound1 = 1.0 / jnp.sqrt(jnp.float32(in_feat))
    bound2 = 1.0 / jnp.sqrt(jnp.float32(hidden))
    w1 = jax.random.uniform(k1, (in_feat, hidden), jnp.float32, -bound1, bound1)
    b1 = jax.random.uniform(k2, (hidden,), jnp.float32, -bound1, bound1)
    w2 = jax.random.uniform(k3, (hidden, cls), jnp.float32, -bound2, bound2)
    b2 = jax.random.uniform(k4, (cls,), jnp.float32, -bound2, bound2)

    # Weight prep happens once (hoisted out of the per-call path).
    params = prepare_wide_logreg_params(w1, b1, w2, b2)
    probs = wide_logistic_regression_relu_apply(x, params)
    jax.block_until_ready(probs)

    # Pure-JAX f32 reference (matches torch: reshape -> Linear -> ReLU -> Linear -> softmax(dim=1)).
    xf = x.reshape(B, -1)
    href = jnp.maximum(xf @ w1 + b1[None, :], 0.0)
    ref = jax.nn.softmax(href @ w2 + b2[None, :], axis=-1)

    assert probs.shape == (B, cls)
    # Exact softmax normalization in the kernel finalize; only bf16 stream error remains.
    assert bool(jnp.all(jnp.abs(jnp.sum(probs, axis=-1) - 1.0) < 2e-3))
    assert bool(jnp.max(jnp.abs(probs - ref)) < 2e-2)

    print("KERNEL_OK")
</pallas_src>

<mosaic_0001>
module attributes {stable_mosaic.version = 11 : i64} {
  func.func @_fused_mlp_softmax_kernel(%arg0: i32, %arg1: i32, %arg2: memref<8x3072xbf16, #tpu.memory_space<vmem>>, %arg3: memref<1x3072x128xbf16, #tpu.memory_space<vmem>>, %arg4: memref<1x128xf32, #tpu.memory_space<vmem>>, %arg5: memref<128x128xbf16, #tpu.memory_space<vmem>>, %arg6: memref<1x128xf32, #tpu.memory_space<vmem>>, %arg7: memref<8x128xf32, #tpu.memory_space<vmem>>, %arg8: memref<8x128xf32, #tpu.memory_space<vmem>>) attributes {dimension_semantics = [#tpu.dimension_semantics<parallel>, #tpu.dimension_semantics<arbitrary>], iteration_bounds = array<i64: 1, 1>, scalar_prefetch = 0 : i64, scratch_operands = 1 : i64, tpu.core_type = #tpu.core_type<tc>, window_params = [{transform_indices = @transform_0, window_bounds = array<i64: 8, 3072>}, {transform_indices = @transform_1, window_bounds = array<i64: 1, 3072, 128>}, {transform_indices = @transform_2, window_bounds = array<i64: 1, 128>}, {transform_indices = @transform_3, window_bounds = array<i64: 128, 128>}, {pipeline_mode = #tpu.pipeline_mode<synchronous>, transform_indices = @transform_4, window_bounds = array<i64: 1, 128>}, {transform_indices = @transform_5, window_bounds = array<i64: 8, 128>}]} {
    %c0_i32 = arith.constant 0 : i32
    %0 = arith.cmpi eq, %arg1, %c0_i32 : i32
    %1 = arith.extui %0 : i1 to i32
    %c0_i32_0 = arith.constant 0 : i32
    %2 = arith.cmpi ne, %1, %c0_i32_0 : i32
    scf.if %2 {
      %c0_17 = arith.constant 0 : index
      %c0_18 = arith.constant 0 : index
      %21 = vector.load %arg6[%c0_17, %c0_18] : memref<1x128xf32, #tpu.memory_space<vmem>>, vector<1x128xf32>
      %22 = vector.shape_cast %21 : vector<1x128xf32> to vector<1x128xf32>
      %23 = vector.broadcast %22 : vector<1x128xf32> to vector<8x128xf32>
      %c0_19 = arith.constant 0 : index
      %c0_20 = arith.constant 0 : index
      %24 = vector.load %arg8[%c0_19, %c0_20] : memref<8x128xf32, #tpu.memory_space<vmem>>, vector<8x128xf32>
      tpu.vector_store %arg8[%c0_19, %c0_20], %23 {strides = array<i32>} : memref<8x128xf32, #tpu.memory_space<vmem>>, vector<8x128xf32>,
    } else {
    }
    %c0 = arith.constant 0 : index
    %c0_1 = arith.constant 0 : index
    %3 = vector.load %arg2[%c0, %c0_1] : memref<8x3072xbf16, #tpu.memory_space<vmem>>, vector<8x3072xbf16>
    %c0_2 = arith.constant 0 : index
    %c0_3 = arith.constant 0 : index
    %c0_4 = arith.constant 0 : index
    %4 = vector.load %arg3[%c0_2, %c0_3, %c0_4] : memref<1x3072x128xbf16, #tpu.memory_space<vmem>>, vector<1x3072x128xbf16>
    %5 = vector.shape_cast %4 : vector<1x3072x128xbf16> to vector<3072x128xbf16>
    %cst = arith.constant dense<0.000000e+00> : vector<8x128xf32>
    %6 = tpu.matmul %3, %5, %cst {dimension_numbers = #tpu.dot_dimension_numbers<[1], [0], [0], [1], [0, 0, 1, 1], [], []>} : vector<8x3072xbf16>, vector<3072x128xbf16>, vector<8x128xf32> -> vector<8x128xf32>
    %c0_5 = arith.constant 0 : index
    %c0_6 = arith.constant 0 : index
    %7 = vector.load %arg4[%c0_5, %c0_6] : memref<1x128xf32, #tpu.memory_space<vmem>>, vector<1x128xf32>
    %8 = vector.broadcast %7 : vector<1x128xf32> to vector<8x128xf32>
    %9 = arith.addf %6, %8 : vector<8x128xf32>
    %cst_7 = arith.constant 0.000000e+00 : f32
    %10 = vector.broadcast %cst_7 : f32 to vector<8x128xf32>
    %11 = arith.maximumf %9, %10 : vector<8x128xf32>
    %c0_8 = arith.constant 0 : index
    %c0_9 = arith.constant 0 : index
    %12 = vector.load %arg8[%c0_8, %c0_9] : memref<8x128xf32, #tpu.memory_space<vmem>>, vector<8x128xf32>
    %13 = arith.truncf %11 : vector<8x128xf32> to vector<8x128xbf16>
    %c0_10 = arith.constant 0 : index
    %c0_11 = arith.constant 0 : index
    %14 = vector.load %arg5[%c0_10, %c0_11] : memref<128x128xbf16, #tpu.memory_space<vmem>>, vector<128x128xbf16>
    %cst_12 = arith.constant dense<0.000000e+00> : vector<8x128xf32>
    %15 = tpu.matmul %13, %14, %cst_12 {dimension_numbers = #tpu.dot_dimension_numbers<[1], [0], [0], [1], [0, 0, 1, 1], [], []>} : vector<8x128xbf16>, vector<128x128xbf16>, vector<8x128xf32> -> vector<8x128xf32>
    %16 = arith.addf %12, %15 : vector<8x128xf32>
    %c0_13 = arith.constant 0 : index
    %c0_14 = arith.constant 0 : index
    %17 = vector.load %arg8[%c0_13, %c0_14] : memref<8x128xf32, #tpu.memory_space<vmem>>, vector<8x128xf32>
    tpu.vector_store %arg8[%c0_13, %c0_14], %16 {strides = array<i32>} : memref<8x128xf32, #tpu.memory_space<vmem>>, vector<8x128xf32>,
    %c0_i32_15 = arith.constant 0 : i32
    %18 = arith.cmpi eq, %arg1, %c0_i32_15 : i32
    %19 = arith.extui %18 : i1 to i32
    %c0_i32_16 = arith.constant 0 : i32
    %20 = arith.cmpi ne, %19, %c0_i32_16 : i32
    scf.if %20 {
      %c0_17 = arith.constant 0 : index
      %c0_18 = arith.constant 0 : index
      %21 = vector.load %arg8[%c0_17, %c0_18] : memref<8x128xf32, #tpu.memory_space<vmem>>, vector<8x128xf32>
      %cst_19 = arith.constant dense<0xFF800000> : vector<8xf32>
      %22 = vector.multi_reduction <maximumf>, %21, %cst_19 [1] : vector<8x128xf32> to vector<8xf32>
      %23 = vector.shape_cast %22 : vector<8xf32> to vector<8x1xf32>
      %24 = vector.broadcast %23 : vector<8x1xf32> to vector<8x128xf32>
      %25 = arith.subf %21, %24 : vector<8x128xf32>
      %26 = math.exp %25 : vector<8x128xf32>
      %cst_20 = arith.constant dense<0.000000e+00> : vector<8xf32>
      %27 = vector.multi_reduction <add>, %26, %cst_20 [1] : vector<8x128xf32> to vector<8xf32>
      %28 = vector.shape_cast %27 : vector<8xf32> to vector<8x1xf32>
      %29 = vector.broadcast %28 : vector<8x1xf32> to vector<8x128xf32>
      %30 = arith.divf %26, %29 : vector<8x128xf32>
      %c0_21 = arith.constant 0 : index
      %c0_22 = arith.constant 0 : index
      %31 = vector.load %arg7[%c0_21, %c0_22] : memref<8x128xf32, #tpu.memory_space<vmem>>, vector<8x128xf32>
      tpu.vector_store %arg7[%c0_21, %c0_22], %30 {strides = array<i32>} : memref<8x128xf32, #tpu.memory_space<vmem>>, vector<8x128xf32>,
    } else {
    }
    return
  }
  func.func @transform_0(%arg0: i32, %arg1: i32) -> (i32, i32) {
    %c0_i32 = arith.constant 0 : i32
    %c0_i32_0 = arith.constant 0 : i32
    return %arg0, %c0_i32 : i32, i32
  }
  func.func @transform_1(%arg0: i32, %arg1: i32) -> (i32, i32, i32) {
    %c0_i32 = arith.constant 0 : i32
    %c0_i32_0 = arith.constant 0 : i32
    %c0_i32_1 = arith.constant 0 : i32
    return %arg1, %c0_i32, %c0_i32_0 : i32, i32, i32
  }
  func.func @transform_2(%arg0: i32, %arg1: i32) -> (i32, i32) {
    %c0_i32 = arith.constant 0 : i32
    %c0_i32_0 = arith.constant 0 : i32
    return %c0_i32, %arg1 : i32, i32
  }
  func.func @transform_3(%arg0: i32, %arg1: i32) -> (i32, i32) {
    %c0_i32 = arith.constant 0 : i32
    %c0_i32_0 = arith.constant 0 : i32
    return %arg1, %c0_i32 : i32, i32
  }
  func.func @transform_4(%arg0: i32, %arg1: i32) -> (i32, i32) {
    %c0_i32 = arith.constant 0 : i32
    %c0_i32_0 = arith.constant 0 : i32
    %c0_i32_1 = arith.constant 0 : i32
    return %c0_i32, %c0_i32_0 : i32, i32
  }
  func.func @transform_5(%arg0: i32, %arg1: i32) -> (i32, i32) {
    %c0_i32 = arith.constant 0 : i32
    %c0_i32_0 = arith.constant 0 : i32
    return %arg0, %c0_i32 : i32, i32
  }
}

</mosaic_0001>

<bundles_post_ra>
// kernel: tpu_custom_call.1
= control target key start
LH: loop header
LB: loop body
LE: loop exit
PB: predicated region body
PF: predicated region fallthrough
CT: control target
= control target key end

     0   :  { %10 = vsyncpa [#allocation4], 0  ;;  %s3228_s0 = inlined_call_operand.hbm [shape: bf16[8,3072], index: 0, kind: input, shape index: {}]   ;;  %s3229_s1 = inlined_call_operand.hbm [shape: bf16[1,3072,128], index: 1, kind: input, shape index: {}]   ;;  %s3230_s2 = inlined_call_operand.vmem [shape: f32[1,128], index: 2, kind: input, shape index: {}]   ;;  %s3231_s3 = inlined_call_operand.hbm [shape: bf16[128,128], index: 3, kind: input, shape index: {}]   ;;  %s3232_s4 = inlined_call_operand.vmem [shape: f32[1,128], index: 4, kind: input, shape index: {}]   ;;  %s3233_s5 = inlined_call_operand.hbm [shape: f32[8,128], index: 5, kind: output, shape index: {}]  }
   0x1   :  { %11 = vsyncpa [#allocation7], 0 }
   0x2   :  { %12 = vsyncpa [#allocation5], 0  ;;  %s3172_s18 = smov [#allocation6]  }
   0x3   :  { %s28_s19 = sshll.u32 %s3172_s18, 4  ;;  %s29_s19 = int_to_ptr.vmem [resolvable:$true] %s28_s19 }
   0x4   :  { %s3094_s20 = scalar_lea.vmem %s29_s19, 24576  ;;  %p3099_p1 = scmp.lt.s32.totalorder %s29_s19, %s29_s19 }
   0x5   :  { %p3095_p0 = scmp.ne.s32.totalorder %s29_s19, %s3094_s20  ;;  %p3100_p2 = scmp.lt.s32.totalorder %s3094_s20, %s3094_s20 }
   0x7   :  { %p3101_p3 = por %p3100_p2, %p3099_p1 }
   0x9   :  { %p3102_p4 = pnand %p3101_p3, %p3095_p0 }
   0xb   :  { %3105 = shalt.err (!%p3102_p4)
}
   0xc   :  { %s3173_s21 = smov 64   ;;  %s3174_s22 = smov 4  }
   0xd   :  { %34 = dma.hbm_to_vmem [thread:$0]  %s3229_s1, 24576, %s29_s19, [#allocation7], %s3173_s21, %s3173_s21, %s3174_s22  }
   0xe   :  { %s3175_s25 = smov [#allocation3]   ;;  %s3176_s27 = smov [#allocation8]  }
   0xf   :  { %s19_s26 = sshll.u32 %s3175_s25, 4  ;;  %s42_s28 = sshll.u32 %s3176_s27, 4  ;;  %s20_s26 = int_to_ptr.vmem [resolvable:$true] %s19_s26  ;;  %s43_s28 = int_to_ptr.vmem [resolvable:$true] %s42_s28 }
  0x10   :  { %s3114_s29 = scalar_lea.vmem %s20_s26, 1536  ;;  %p3119_p6 = scmp.lt.s32.totalorder %s20_s26, %s20_s26 }
  0x11   :  { %p3115_p5 = scmp.ne.s32.totalorder %s20_s26, %s3114_s29  ;;  %p3120_p7 = scmp.lt.s32.totalorder %s3114_s29, %s3114_s29 }
  0x13   :  { %p3121_p8 = por %p3120_p7, %p3119_p6 }
  0x15   :  { %p3122_p9 = pnand %p3121_p8, %p3115_p5 }
  0x17   :  { %3125 = shalt.err (!%p3122_p9)
}
  0x18   :  { %22 = dma.hbm_to_vmem [thread:$0]  %s3228_s0, 1536, %s20_s26, [#allocation4]  }
  0x19   :  { %s3134_s7 = scalar_lea.vmem %s43_s28, 1024  ;;  %p3139_p11 = scmp.lt.s32.totalorder %s43_s28, %s43_s28 }
  0x1a   :  { %p3135_p10 = scmp.ne.s32.totalorder %s43_s28, %s3134_s7  ;;  %p3140_p12 = scmp.lt.s32.totalorder %s3134_s7, %s3134_s7 }
  0x1c   :  { %p3141_p13 = por %p3140_p12, %p3139_p11 }
  0x1e   :  { %p3142_p0 = pnand %p3141_p13, %p3135_p10 }
  0x20   :  { %3145 = shalt.err (!%p3142_p0)
}
  0x21   :  { %48 = dma.hbm_to_vmem [thread:$0]  %s3231_s3, 1024, %s43_s28, [#allocation7], %s3173_s21, %s3173_s21, %s3174_s22  }
  0x22   :  { %3166 = dma.done.wait [#allocation4], 1536  }
  0x23   :  { %3167 = vsyncadd [#allocation4], 4294965760 }
  0x24   :  { %3168 = dma.done.wait [#allocation7], 25600  }
  0x25   :  { %3169 = vsyncadd [#allocation7], 4294941696  ;;  %v2858_v0 = vld [vmem:[#allocation6 + $0x78] sm:$0xff]   ;;  %v2862_v4 = vld [vmem:[#allocation6 + $0x70] sm:$0xff]   ;;  %vm3178_vm0 = vmmov 0   ;;  %s3179_s10 = smov [#allocation9]  }
  0x26   :  { %v2859_v1 = vld [vmem:[#allocation6 + $0xf8] sm:$0xff]   ;;  %2557 = vmatprep.subr.bf16.mxu0 %v2858_v0  ;;  %v2863_v5 = vld [vmem:[#allocation6 + $0xf0] sm:$0xff]   ;;  %v2866_v8 = vld [vmem:[#allocation6 + $0x68] sm:$0xff]   ;;  %s2321_s11 = sshll.u32 %s3179_s10, 4  ;;  %s2322_s11 = int_to_ptr.vmem [resolvable:$true] %s2321_s11 }
  0x27   :  { %v2860_v2 = vld [vmem:[#allocation6 + $0x38] sm:$0xff]   ;;  %2579 = vmatprep.subr.bf16.mxu1 %v2859_v1  ;;  %v2864_v6 = vld [vmem:[#allocation6 + $0x30] sm:$0xff]   ;;  %v2867_v9 = vld [vmem:[#allocation6 + $0xe8] sm:$0xff]   ;;  %p3151_p2 = scmp.lt.s32.totalorder %s2322_s11, %s2322_s11 }
  0x28   :  { %v2861_v3 = vld [vmem:[#allocation6 + $0xb8] sm:$0xff]   ;;  %2558 = vmatpush3.bf16.msra.mxu0 %v2860_v2  ;;  %v2865_v7 = vld [vmem:[#allocation6 + $0xb0] sm:$0xff]   ;;  %v2868_v10 = vld [vmem:[#allocation6 + $0x28] sm:$0xff]  }
  0x29   :  { %2580 = vmatpush3.bf16.msra.mxu1 %v2861_v3  ;;  %2559 = vmatprep.subr.bf16.mxu0 %v2862_v4  ;;  %v2869_v11 = vld [vmem:[#allocation6 + $0xa8] sm:$0xff]   ;;  %v2870_v12 = vld [vmem:[#allocation6 + $0x60] sm:$0xff]   ;;  %v2874_v16 = vld [vmem:[#allocation6 + $0x58] sm:$0xff]  }
  0x2a   :  { %2581 = vmatprep.subr.bf16.mxu1 %v2863_v5  ;;  %v2871_v13 = vld [vmem:[#allocation6 + $0xe0] sm:$0xff]   ;;  %v2875_v17 = vld [vmem:[#allocation6 + $0xd8] sm:$0xff]   ;;  %v2878_v20 = vld [vmem:[#allocation6 + $0x50] sm:$0xff]  }
  0x2b   :  { %v2872_v14 = vld [vmem:[#allocation6 + $0x20] sm:$0xff]   ;;  %v2876_v18 = vld [vmem:[#allocation6 + $0x18] sm:$0xff]   ;;  %v2879_v21 = vld [vmem:[#allocation6 + $0xd0] sm:$0xff]  }
  0x2c   :  { %2560 = vmatpush3.bf16.msra.mxu0 %v2864_v6  ;;  %v2873_v15 = vld [vmem:[#allocation6 + $0xa0] sm:$0xff]   ;;  %v2877_v19 = vld [vmem:[#allocation6 + $0x98] sm:$0xff]   ;;  %v2880_v22 = vld [vmem:[#allocation6 + $0x10] sm:$0xff]  }
  0x2d   :  { %2582 = vmatpush3.bf16.msra.mxu1 %v2865_v7  ;;  %2561 = vmatprep.subr.bf16.mxu0 %v2866_v8  ;;  %v2881_v23 = vld [vmem:[#allocation6 + $0x90] sm:$0xff]   ;;  %v2882_v24 = vld [vmem:[#allocation6 + $0x48] sm:$0xff]   ;;  %v2886_v28 = vld [vmem:[#allocation6 + $0x40] sm:$0xff]  }
  0x2e   :  { %2583 = vmatprep.subr.bf16.mxu1 %v2867_v9  ;;  %v2883_v25 = vld [vmem:[#allocation6 + $0xc8] sm:$0xff]   ;;  %v2887_v29 = vld [vmem:[#allocation6 + $0xc0] sm:$0xff]   ;;  %v2894_v38 = vld [vmem:[#allocation6 + $0x178] sm:$0xff]  }
  0x2f   :  { %v2884_v26 = vld [vmem:[#allocation6 + $0x8] sm:$0xff]   ;;  %v2888_v30 = vld [vmem:[#allocation6] sm:$0xff]   ;;  %v2895_v39 = vld [vmem:[#allocation6 + $0x1f8] sm:$0xff]  }
  0x30   :  { %2562 = vmatpush3.bf16.msra.mxu0 %v2868_v10  ;;  %v2885_v27 = vld [vmem:[#allocation6 + $0x88] sm:$0xff]   ;;  %v2889_v31 = vld [vmem:[#allocation6 + $0x80] sm:$0xff]   ;;  %v2896_v40 = vld [vmem:[#allocation6 + $0x138] sm:$0xff]  }
  0x31   :  { %2584 = vmatpush3.bf16.msra.mxu1 %v2869_v11  ;;  %2563 = vmatprep.subr.bf16.mxu0 %v2870_v12  ;;  %v73_v32 = vld [vmem:[#allocation3] sm:$0xff]  ;;  %v74_v33 = vld [vmem:[#allocation3 + $0x8] sm:$0xff]  ;;  %v2897_v41 = vld [vmem:[#allocation6 + $0x1b8] sm:$0xff]  }
  0x32   :  { %2585 = vmatprep.subr.bf16.mxu1 %v2871_v13  ;;  %v2333_v34 = vcombine.low %v73_v32, %v73_v32  ;;  %v2334_v35 = vcombine.high %v73_v32, %v73_v32  ;;  %v2335_v36 = vcombine.low %v74_v33, %v74_v33  ;;  %v2336_v37 = vcombine.high %v74_v33, %v74_v33  ;;  %v2898_v42 = vld [vmem:[#allocation6 + $0x170] sm:$0xff]   ;;  %v2902_v46 = vld [vmem:[#allocation6 + $0x168] sm:$0xff]   ;;  %v2906_v50 = vld [vmem:[#allocation6 + $0x160] sm:$0xff]  }
  0x33   :  { %v2899_v43 = vld [vmem:[#allocation6 + $0x1f0] sm:$0xff]   ;;  %v2903_v47 = vld [vmem:[#allocation6 + $0x1e8] sm:$0xff]   ;;  %v2907_v51 = vld [vmem:[#allocation6 + $0x1e0] sm:$0xff]  }
  0x34   :  { %2564 = vmatpush3.bf16.msra.mxu0 %v2872_v14  ;;  %1744 = vmatprep.mubr.bf16.mxu0 %v2334_v35  ;;  %v2900_v44 = vld [vmem:[#allocation6 + $0x130] sm:$0xff]   ;;  %v2904_v48 = vld [vmem:[#allocation6 + $0x128] sm:$0xff]   ;;  %v2908_v52 = vld [vmem:[#allocation6 + $0x120] sm:$0xff]  }
  0x35   :  { %2586 = vmatpush3.bf16.msra.mxu1 %v2873_v15  ;;  %2565 = vmatprep.subr.bf16.mxu0 %v2874_v16  ;;  %v2901_v45 = vld [vmem:[#allocation6 + $0x1b0] sm:$0xff]   ;;  %v2905_v49 = vld [vmem:[#allocation6 + $0x1a8] sm:$0xff]   ;;  %v2909_v53 = vld [vmem:[#allocation6 + $0x1a0] sm:$0xff]  }
  0x36   :  { %2587 = vmatprep.subr.bf16.mxu1 %v2875_v17  ;;  %1784 = vmatprep.mubr.bf16.mxu1 %v2336_v37  ;;  %v2910_v54 = vld [vmem:[#allocation6 + $0x158] sm:$0xff]   ;;  %v2914_v58 = vld [vmem:[#allocation6 + $0x150] sm:$0xff]   ;;  %v2918_v62 = vld [vmem:[#allocation6 + $0x148] sm:$0xff]  }
  0x37   :  { %v2911_v55 = vld [vmem:[#allocation6 + $0x1d8] sm:$0xff]   ;;  %v2915_v59 = vld [vmem:[#allocation6 + $0x1d0] sm:$0xff]   ;;  %v2919_v63 = vld [vmem:[#allocation6 + $0x1c8] sm:$0xff]  }
  0x38   :  { %2566 = vmatpush3.bf16.msra.mxu0 %v2876_v18  ;;  %v2912_v56 = vld [vmem:[#allocation6 + $0x118] sm:$0xff]   ;;  %v2916_v60 = vld [vmem:[#allocation6 + $0x110] sm:$0xff]   ;;  %v2920_v0 = vld [vmem:[#allocation6 + $0x108] sm:$0xff]  }
  0x39   :  { %2588 = vmatpush3.bf16.msra.mxu1 %v2877_v19  ;;  %2567 = vmatprep.subr.bf16.mxu0 %v2878_v20  ;;  %v2913_v57 = vld [vmem:[#allocation6 + $0x198] sm:$0xff]   ;;  %v2917_v61 = vld [vmem:[#allocation6 + $0x190] sm:$0xff]   ;;  %v2921_v1 = vld [vmem:[#allocation6 + $0x188] sm:$0xff]  }
  0x3a   :  { %2589 = vmatprep.subr.bf16.mxu1 %v2879_v21  ;;  %v2922_v2 = vld [vmem:[#allocation6 + $0x140] sm:$0xff]   ;;  %v75_v6 = vld [vmem:[#allocation3 + $0x10] sm:$0xff]  ;;  %v76_v9 = vld [vmem:[#allocation3 + $0x18] sm:$0xff] }
  0x3b   :  { %v2923_v3 = vld [vmem:[#allocation6 + $0x1c0] sm:$0xff]   ;;  %v2337_v7 = vcombine.low %v75_v6, %v75_v6  ;;  %v2338_v8 = vcombine.high %v75_v6, %v75_v6  ;;  %v2339_v10 = vcombine.low %v76_v9, %v76_v9  ;;  %v2340_v11 = vcombine.high %v76_v9, %v76_v9  ;;  %v2930_v12 = vld [vmem:[#allocation6 + $0x278] sm:$0xff]   ;;  %v2934_v16 = vld [vmem:[#allocation6 + $0x270] sm:$0xff]  }
  0x3c   :  { %2568 = vmatpush3.bf16.msra.mxu0 %v2880_v22  ;;  %v2924_v4 = vld [vmem:[#allocation6 + $0x100] sm:$0xff]   ;;  %v2931_v13 = vld [vmem:[#allocation6 + $0x2f8] sm:$0xff]   ;;  %v2935_v17 = vld [vmem:[#allocation6 + $0x2f0] sm:$0xff]  }
  0x3d   :  { %2590 = vmatpush3.bf16.msra.mxu1 %v2881_v23  ;;  %2569 = vmatprep.subr.bf16.mxu0 %v2882_v24  ;;  %v2925_v5 = vld [vmem:[#allocation6 + $0x180] sm:$0xff]   ;;  %v2932_v14 = vld [vmem:[#allocation6 + $0x238] sm:$0xff]   ;;  %v2936_v18 = vld [vmem:[#allocation6 + $0x230] sm:$0xff]  }
  0x3e   :  { %2591 = vmatprep.subr.bf16.mxu1 %v2883_v25  ;;  %v2933_v15 = vld [vmem:[#allocation6 + $0x2b8] sm:$0xff]   ;;  %v2937_v19 = vld [vmem:[#allocation6 + $0x2b0] sm:$0xff]   ;;  %v2938_v20 = vld [vmem:[#allocation6 + $0x268] sm:$0xff]  }
  0x3f   :  { %v2939_v21 = vld [vmem:[#allocation6 + $0x2e8] sm:$0xff]   ;;  %v2942_v24 = vld [vmem:[#allocation6 + $0x260] sm:$0xff]   ;;  %v2950_v32 = vld [vmem:[#allocation6 + $0x250] sm:$0xff]  }
  0x40   :  { %2570 = vmatpush3.bf16.msra.mxu0 %v2884_v26  ;;  %v2940_v22 = vld [vmem:[#allocation6 + $0x228] sm:$0xff]   ;;  %v2943_v25 = vld [vmem:[#allocation6 + $0x2e0] sm:$0xff]   ;;  %v2951_v33 = vld [vmem:[#allocation6 + $0x2d0] sm:$0xff]  }
  0x41   :  { %2592 = vmatpush3.bf16.msra.mxu1 %v2885_v27  ;;  %2571 = vmatprep.subr.bf16.mxu0 %v2886_v28  ;;  %v2941_v23 = vld [vmem:[#allocation6 + $0x2a8] sm:$0xff]   ;;  %v2944_v26 = vld [vmem:[#allocation6 + $0x220] sm:$0xff]   ;;  %v2946_v28 = vld [vmem:[#allocation6 + $0x258] sm:$0xff]  }
  0x42   :  { %2593 = vmatprep.subr.bf16.mxu1 %v2887_v29  ;;  %v2945_v27 = vld [vmem:[#allocation6 + $0x2a0] sm:$0xff]   ;;  %v2947_v29 = vld [vmem:[#allocation6 + $0x2d8] sm:$0xff]   ;;  %v2953_v35 = vld [vmem:[#allocation6 + $0x290] sm:$0xff]  }
  0x43   :  { %v2955_v37 = vld [vmem:[#allocation6 + $0x2c8] sm:$0xff]   ;;  %v2986_v6 = vld [vmem:[#allocation6 + $0x350] sm:$0xff]  }
  0x44   :  { %2572 = vmatpush3.bf16.msra.mxu0 %v2888_v30  ;;  %v2948_v30 = vld [vmem:[#allocation6 + $0x218] sm:$0xff]   ;;  %v2989_v9 = vld [vmem:[#allocation6 + $0x390] sm:$0xff]  }
  0x45   :  { %2594 = vmatpush3.bf16.msra.mxu1 %v2889_v31  ;;  %2601 = vmatprep.subr.bf16.mxu0 %v2894_v38  ;;  %v2949_v31 = vld [vmem:[#allocation6 + $0x298] sm:$0xff]   ;;  %v2956_v38 = vld [vmem:[#allocation6 + $0x208] sm:$0xff]  }
  0x46   :  { %2623 = vmatprep.subr.bf16.mxu1 %v2895_v39  ;;  %v2957_v39 = vld [vmem:[#allocation6 + $0x288] sm:$0xff]  }
  0x47   :  { %1745 = vmatmul.mubr.bf16.vlgmr.msra.gmra.mxu0 %v2333_v34  ;;  %v2952_v34 = vld [vmem:[#allocation6 + $0x210] sm:$0xff]  }
  0x48   :  { %1785 = vmatmul.mubr.bf16.vlgmr.msra.gmra.mxu1 %v2335_v36  ;;  %2602 = vmatpush3.bf16.msra.mxu0 %v2896_v40  ;;  %v2954_v36 = vld [vmem:[#allocation6 + $0x248] sm:$0xff]   ;;  %v2958_v40 = vld [vmem:[#allocation6 + $0x240] sm:$0xff]  }
  0x49   :  { %2624 = vmatpush3.bf16.msra.mxu1 %v2897_v41  ;;  %2603 = vmatprep.subr.bf16.mxu0 %v2898_v42  ;;  %v2959_v41 = vld [vmem:[#allocation6 + $0x2c0] sm:$0xff]  }
  0x4a   :  { %2625 = vmatprep.subr.bf16.mxu1 %v2899_v43  ;;  %1824 = vmatprep.mubr.bf16.mxu0 %v2338_v8  ;;  %v2960_v42 = vld [vmem:[#allocation6 + $0x200] sm:$0xff]   ;;  %v2988_v8 = vld [vmem:[#allocation6 + $0x310] sm:$0xff]  }
  0x4b   :  { %1864 = vmatprep.mubr.bf16.mxu1 %v2340_v11  ;;  %v2961_v43 = vld [vmem:[#allocation6 + $0x280] sm:$0xff]   ;;  %v2991_v11 = vld [vmem:[#allocation6 + $0x3c8] sm:$0xff]  }
  0x4c   :  { %2604 = vmatpush3.bf16.msra.mxu0 %v2900_v44  ;;  %v77_v44 = vld [vmem:[#allocation3 + $0x20] sm:$0xff] }
  0x4d   :  { %2626 = vmatpush3.bf16.msra.mxu1 %v2901_v45  ;;  %2605 = vmatprep.subr.bf16.mxu0 %v2902_v46  ;;  %v78_v45 = vld [vmem:[#allocation3 + $0x28] sm:$0xff]  ;;  %v2341_v46 = vcombine.low %v77_v44, %v77_v44 }
  0x4e   :  { %2627 = vmatprep.subr.bf16.mxu1 %v2903_v47  ;;  %v2342_v47 = vcombine.high %v77_v44, %v77_v44  ;;  %v3022_v44 = vld [vmem:[#allocation6 + $0x450] sm:$0xff]  }
  0x50   :  { %2606 = vmatpush3.bf16.msra.mxu0 %v2904_v48  ;;  %v2343_v48 = vcombine.low %v78_v45, %v78_v45 }
  0x51   :  { %2628 = vmatpush3.bf16.msra.mxu1 %v2905_v49  ;;  %2607 = vmatprep.subr.bf16.mxu0 %v2906_v50  ;;  %v2344_v49 = vcombine.high %v78_v45, %v78_v45  ;;  %v2966_v50 = vld [vmem:[#allocation6 + $0x378] sm:$0xff]   ;;  %v3023_v45 = vld [vmem:[#allocation6 + $0x4d0] sm:$0xff]  }
  0x52   :  { %2629 = vmatprep.subr.bf16.mxu1 %v2907_v51  ;;  %v2967_v51 = vld [vmem:[#allocation6 + $0x3f8] sm:$0xff]  }
  0x54   :  { %2608 = vmatpush3.bf16.msra.mxu0 %v2908_v52  ;;  %v2968_v52 = vld [vmem:[#allocation6 + $0x338] sm:$0xff]  }
  0x55   :  { %2630 = vmatpush3.bf16.msra.mxu1 %v2909_v53  ;;  %2609 = vmatprep.subr.bf16.mxu0 %v2910_v54  ;;  %v2969_v53 = vld [vmem:[#allocation6 + $0x3b8] sm:$0xff]   ;;  %v2970_v54 = vld [vmem:[#allocation6 + $0x370] sm:$0xff]  }
  0x56   :  { %2631 = vmatprep.subr.bf16.mxu1 %v2911_v55  ;;  %v2971_v55 = vld [vmem:[#allocation6 + $0x3f0] sm:$0xff]  }
  0x58   :  { %2610 = vmatpush3.bf16.msra.mxu0 %v2912_v56  ;;  %v2972_v56 = vld [vmem:[#allocation6 + $0x330] sm:$0xff]  }
  0x59   :  { %2632 = vmatpush3.bf16.msra.mxu1 %v2913_v57  ;;  %2611 = vmatprep.subr.bf16.mxu0 %v2914_v58  ;;  %v2973_v57 = vld [vmem:[#allocation6 + $0x3b0] sm:$0xff]   ;;  %v2974_v58 = vld [vmem:[#allocation6 + $0x368] sm:$0xff]  }
  0x5a   :  { %2633 = vmatprep.subr.bf16.mxu1 %v2915_v59  ;;  %v2975_v59 = vld [vmem:[#allocation6 + $0x3e8] sm:$0xff]  }
  0x5c   :  { %2612 = vmatpush3.bf16.msra.mxu0 %v2916_v60  ;;  %v2976_v60 = vld [vmem:[#allocation6 + $0x328] sm:$0xff]  }
  0x5d   :  { %2634 = vmatpush3.bf16.msra.mxu1 %v2917_v61  ;;  %2613 = vmatprep.subr.bf16.mxu0 %v2918_v62  ;;  %v2977_v61 = vld [vmem:[#allocation6 + $0x3a8] sm:$0xff]   ;;  %v2978_v62 = vld [vmem:[#allocation6 + $0x360] sm:$0xff]  }
  0x5e   :  { %2635 = vmatprep.subr.bf16.mxu1 %v2919_v63  ;;  %v2979_v63 = vld [vmem:[#allocation6 + $0x3e0] sm:$0xff]  }
  0x60   :  { %2614 = vmatpush3.bf16.msra.mxu0 %v2920_v0  ;;  %v2980_v0 = vld [vmem:[#allocation6 + $0x320] sm:$0xff]  }
  0x61   :  { %2636 = vmatpush3.bf16.msra.mxu1 %v2921_v1  ;;  %2615 = vmatprep.subr.bf16.mxu0 %v2922_v2  ;;  %v2981_v1 = vld [vmem:[#allocation6 + $0x3a0] sm:$0xff]   ;;  %v2982_v2 = vld [vmem:[#allocation6 + $0x358] sm:$0xff]  }
  0x62   :  { %2637 = vmatprep.subr.bf16.mxu1 %v2923_v3  ;;  %v2983_v3 = vld [vmem:[#allocation6 + $0x3d8] sm:$0xff]  }
  0x64   :  { %2616 = vmatpush3.bf16.msra.mxu0 %v2924_v4  ;;  %v2984_v4 = vld [vmem:[#allocation6 + $0x318] sm:$0xff]  }
  0x65   :  { %2638 = vmatpush3.bf16.msra.mxu1 %v2925_v5  ;;  %2645 = vmatprep.subr.bf16.mxu0 %v2930_v12  ;;  %v2985_v5 = vld [vmem:[#allocation6 + $0x398] sm:$0xff]   ;;  %v2992_v12 = vld [vmem:[#allocation6 + $0x308] sm:$0xff]  }
  0x66   :  { %2667 = vmatprep.subr.bf16.mxu1 %v2931_v13  ;;  %v2993_v13 = vld [vmem:[#allocation6 + $0x388] sm:$0xff]  }
  0x67   :  { %1825 = vmatmul.mubr.bf16.vlgmr.msra.gmra.mxu0 %v2337_v7  ;;  %v2987_v7 = vld [vmem:[#allocation6 + $0x3d0] sm:$0xff]  }
  0x68   :  { %1865 = vmatmul.mubr.bf16.vlgmr.msra.gmra.mxu1 %v2339_v10  ;;  %2646 = vmatpush3.bf16.msra.mxu0 %v2932_v14  ;;  %v2990_v10 = vld [vmem:[#allocation6 + $0x348] sm:$0xff]   ;;  %v2994_v14 = vld [vmem:[#allocation6 + $0x340] sm:$0xff]  }
  0x69   :  { %2668 = vmatpush3.bf16.msra.mxu1 %v2933_v15  ;;  %2647 = vmatprep.subr.bf16.mxu0 %v2934_v16  ;;  %v2995_v15 = vld [vmem:[#allocation6 + $0x3c0] sm:$0xff]  }
  0x6a   :  { %2669 = vmatprep.subr.bf16.mxu1 %v2935_v17  ;;  %1904 = vmatprep.mubr.bf16.mxu0 %v2342_v47  ;;  %v2996_v16 = vld [vmem:[#allocation6 + $0x300] sm:$0xff]   ;;  %v3025_v47 = vld [vmem:[#allocation6 + $0x490] sm:$0xff]  }
  0x6b   :  { %1944 = vmatprep.mubr.bf16.mxu1 %v2344_v49  ;;  %v2997_v17 = vld [vmem:[#allocation6 + $0x380] sm:$0xff]   ;;  %v3027_v49 = vld [vmem:[#allocation6 + $0x4c8] sm:$0xff]  }
  0x6c   :  { %2648 = vmatpush3.bf16.msra.mxu0 %v2936_v18  ;;  %v79_v18 = vld [vmem:[#allocation3 + $0x30] sm:$0xff] }
  0x6d   :  { %2670 = vmatpush3.bf16.msra.mxu1 %v2937_v19  ;;  %2649 = vmatprep.subr.bf16.mxu0 %v2938_v20  ;;  %v80_v19 = vld [vmem:[#allocation3 + $0x38] sm:$0xff]  ;;  %v2345_v20 = vcombine.low %v79_v18, %v79_v18 }
  0x6e   :  { %2671 = vmatprep.subr.bf16.mxu1 %v2939_v21  ;;  %v2346_v21 = vcombine.high %v79_v18, %v79_v18  ;;  %v3058_v18 = vld [vmem:[#allocation6 + $0x550] sm:$0xff]  }
  0x70   :  { %2650 = vmatpush3.bf16.msra.mxu0 %v2940_v22  ;;  %v2347_v22 = vcombine.low %v80_v19, %v80_v19 }
  0x71   :  { %2672 = vmatpush3.bf16.msra.mxu1 %v2941_v23  ;;  %2651 = vmatprep.subr.bf16.mxu0 %v2942_v24  ;;  %v3002_v23 = vld [vmem:[#allocation6 + $0x478] sm:$0xff]   ;;  %v2348_v24 = vcombine.high %v80_v19, %v80_v19  ;;  %v3059_v19 = vld [vmem:[#allocation6 + $0x5d0] sm:$0xff]  }
  0x72   :  { %2673 = vmatprep.subr.bf16.mxu1 %v2943_v25  ;;  %v3003_v25 = vld [vmem:[#allocation6 + $0x4f8] sm:$0xff]  }
  0x74   :  { %2652 = vmatpush3.bf16.msra.mxu0 %v2944_v26  ;;  %v3004_v26 = vld [vmem:[#allocation6 + $0x438] sm:$0xff]  }
  0x75   :  { %2674 = vmatpush3.bf16.msra.mxu1 %v2945_v27  ;;  %2653 = vmatprep.subr.bf16.mxu0 %v2946_v28  ;;  %v3005_v27 = vld [vmem:[#allocation6 + $0x4b8] sm:$0xff]   ;;  %v3006_v28 = vld [vmem:[#allocation6 + $0x470] sm:$0xff]  }
  0x76   :  { %2675 = vmatprep.subr.bf16.mxu1 %v2947_v29  ;;  %v3007_v29 = vld [vmem:[#allocation6 + $0x4f0] sm:$0xff]  }
  0x78   :  { %2654 = vmatpush3.bf16.msra.mxu0 %v2948_v30  ;;  %v3008_v30 = vld [vmem:[#allocation6 + $0x430] sm:$0xff]  }
  0x79   :  { %2676 = vmatpush3.bf16.msra.mxu1 %v2949_v31  ;;  %2655 = vmatprep.subr.bf16.mxu0 %v2950_v32  ;;  %v3009_v31 = vld [vmem:[#allocation6 + $0x4b0] sm:$0xff]   ;;  %v3010_v32 = vld [vmem:[#allocation6 + $0x468] sm:$0xff]  }
  0x7a   :  { %2677 = vmatprep.subr.bf16.mxu1 %v2951_v33  ;;  %v3011_v33 = vld [vmem:[#allocation6 + $0x4e8] sm:$0xff]  }
  0x7c   :  { %2656 = vmatpush3.bf16.msra.mxu0 %v2952_v34  ;;  %v3012_v34 = vld [vmem:[#allocation6 + $0x428] sm:$0xff]  }
  0x7d   :  { %2678 = vmatpush3.bf16.msra.mxu1 %v2953_v35  ;;  %2657 = vmatprep.subr.bf16.mxu0 %v2954_v36  ;;  %v3013_v35 = vld [vmem:[#allocation6 + $0x4a8] sm:$0xff]   ;;  %v3014_v36 = vld [vmem:[#allocation6 + $0x460] sm:$0xff]  }
  0x7e   :  { %2679 = vmatprep.subr.bf16.mxu1 %v2955_v37  ;;  %v3015_v37 = vld [vmem:[#allocation6 + $0x4e0] sm:$0xff]  }
  0x80   :  { %2658 = vmatpush3.bf16.msra.mxu0 %v2956_v38  ;;  %v3016_v38 = vld [vmem:[#allocation6 + $0x420] sm:$0xff]  }
  0x81   :  { %2680 = vmatpush3.bf16.msra.mxu1 %v2957_v39  ;;  %2659 = vmatprep.subr.bf16.mxu0 %v2958_v40  ;;  %v3017_v39 = vld [vmem:[#allocation6 + $0x4a0] sm:$0xff]   ;;  %v3018_v40 = vld [vmem:[#allocation6 + $0x458] sm:$0xff]  }
  0x82   :  { %2681 = vmatprep.subr.bf16.mxu1 %v2959_v41  ;;  %v3019_v41 = vld [vmem:[#allocation6 + $0x4d8] sm:$0xff]  }
  0x84   :  { %2660 = vmatpush3.bf16.msra.mxu0 %v2960_v42  ;;  %v3020_v42 = vld [vmem:[#allocation6 + $0x418] sm:$0xff]  }
  0x85   :  { %2682 = vmatpush3.bf16.msra.mxu1 %v2961_v43  ;;  %2689 = vmatprep.subr.bf16.mxu0 %v2966_v50  ;;  %v3021_v43 = vld [vmem:[#allocation6 + $0x498] sm:$0xff]   ;;  %v3028_v50 = vld [vmem:[#allocation6 + $0x408] sm:$0xff]  }
  0x86   :  { %2711 = vmatprep.subr.bf16.mxu1 %v2967_v51  ;;  %v3029_v51 = vld [vmem:[#allocation6 + $0x488] sm:$0xff]  }
  0x87   :  { %1905 = vmatmul.mubr.bf16.vlgmr.msra.gmra.mxu0 %v2341_v46  ;;  %v3024_v46 = vld [vmem:[#allocation6 + $0x410] sm:$0xff]  }
  0x88   :  { %1945 = vmatmul.mubr.bf16.vlgmr.msra.gmra.mxu1 %v2343_v48  ;;  %2690 = vmatpush3.bf16.msra.mxu0 %v2968_v52  ;;  %v3026_v48 = vld [vmem:[#allocation6 + $0x448] sm:$0xff]   ;;  %v3030_v52 = vld [vmem:[#allocation6 + $0x440] sm:$0xff]  }
  0x89   :  { %2712 = vmatpush3.bf16.msra.mxu1 %v2969_v53  ;;  %2691 = vmatprep.subr.bf16.mxu0 %v2970_v54  ;;  %v3031_v53 = vld [vmem:[#allocation6 + $0x4c0] sm:$0xff]  }
  0x8a   :  { %2713 = vmatprep.subr.bf16.mxu1 %v2971_v55  ;;  %1984 = vmatprep.mubr.bf16.mxu0 %v2346_v21  ;;  %v3032_v54 = vld [vmem:[#allocation6 + $0x400] sm:$0xff]   ;;  %v3061_v21 = vld [vmem:[#allocation6 + $0x590] sm:$0xff]  }
  0x8b   :  { %2024 = vmatprep.mubr.bf16.mxu1 %v2348_v24  ;;  %v3033_v55 = vld [vmem:[#allocation6 + $0x480] sm:$0xff]   ;;  %v3064_v24 = vld [vmem:[#allocation6 + $0x508] sm:$0xff]  }
  0x8c   :  { %2692 = vmatpush3.bf16.msra.mxu0 %v2972_v56  ;;  %v81_v56 = vld [vmem:[#allocation3 + $0x40] sm:$0xff] }
  0x8d   :  { %2714 = vmatpush3.bf16.msra.mxu1 %v2973_v57  ;;  %2693 = vmatprep.subr.bf16.mxu0 %v2974_v58  ;;  %v2349_v57 = vcombine.low %v81_v56, %v81_v56  ;;  %v2350_v58 = vcombine.high %v81_v56, %v81_v56 }
  0x8e   :  { %2715 = vmatprep.subr.bf16.mxu1 %v2975_v59  ;;  %v82_v59 = vld [vmem:[#allocation3 + $0x48] sm:$0xff] }
  0x90   :  { %2694 = vmatpush3.bf16.msra.mxu0 %v2976_v60  ;;  %v2351_v60 = vcombine.low %v82_v59, %v82_v59 }
  0x91   :  { %2716 = vmatpush3.bf16.msra.mxu1 %v2977_v61  ;;  %2695 = vmatprep.subr.bf16.mxu0 %v2978_v62  ;;  %v2352_v61 = vcombine.high %v82_v59, %v82_v59  ;;  %v3038_v62 = vld [vmem:[#allocation6 + $0x578] sm:$0xff]  }
  0x92   :  { %2717 = vmatprep.subr.bf16.mxu1 %v2979_v63  ;;  %v3039_v63 = vld [vmem:[#allocation6 + $0x5f8] sm:$0xff]  }
  0x94   :  { %2696 = vmatpush3.bf16.msra.mxu0 %v2980_v0  ;;  %v3040_v0 = vld [vmem:[#allocation6 + $0x538] sm:$0xff]  }
  0x95   :  { %2718 = vmatpush3.bf16.msra.mxu1 %v2981_v1  ;;  %2697 = vmatprep.subr.bf16.mxu0 %v2982_v2  ;;  %v3041_v1 = vld [vmem:[#allocation6 + $0x5b8] sm:$0xff]   ;;  %v3042_v2 = vld [vmem:[#allocation6 + $0x570] sm:$0xff]  }
  0x96   :  { %2719 = vmatprep.subr.bf16.mxu1 %v2983_v3  ;;  %v3043_v3 = vld [vmem:[#allocation6 + $0x5f0] sm:$0xff]  }
  0x98   :  { %2698 = vmatpush3.bf16.msra.mxu0 %v2984_v4  ;;  %v3044_v4 = vld [vmem:[#allocation6 + $0x530] sm:$0xff]  }
  0x99   :  { %2720 = vmatpush3.bf16.msra.mxu1 %v2985_v5  ;;  %2699 = vmatprep.subr.bf16.mxu0 %v2986_v6  ;;  %v3045_v5 = vld [vmem:[#allocation6 + $0x5b0] sm:$0xff]   ;;  %v3046_v6 = vld [vmem:[#allocation6 + $0x568] sm:$0xff]  }
  0x9a   :  { %2721 = vmatprep.subr.bf16.mxu1 %v2987_v7  ;;  %v3047_v7 = vld [vmem:[#allocation6 + $0x5e8] sm:$0xff]  }
  0x9c   :  { %2700 = vmatpush3.bf16.msra.mxu0 %v2988_v8  ;;  %v3048_v8 = vld [vmem:[#allocation6 + $0x528] sm:$0xff]  }
  0x9d   :  { %2722 = vmatpush3.bf16.msra.mxu1 %v2989_v9  ;;  %2701 = vmatprep.subr.bf16.mxu0 %v2990_v10  ;;  %v3049_v9 = vld [vmem:[#allocation6 + $0x5a8] sm:$0xff]   ;;  %v3050_v10 = vld [vmem:[#allocation6 + $0x560] sm:$0xff]  }
  0x9e   :  { %2723 = vmatprep.subr.bf16.mxu1 %v2991_v11  ;;  %v3051_v11 = vld [vmem:[#allocation6 + $0x5e0] sm:$0xff]  }
  0xa0   :  { %2702 = vmatpush3.bf16.msra.mxu0 %v2992_v12  ;;  %v3052_v12 = vld [vmem:[#allocation6 + $0x520] sm:$0xff]  }
  0xa1   :  { %2724 = vmatpush3.bf16.msra.mxu1 %v2993_v13  ;;  %2703 = vmatprep.subr.bf16.mxu0 %v2994_v14  ;;  %v3053_v13 = vld [vmem:[#allocation6 + $0x5a0] sm:$0xff]   ;;  %v3054_v14 = vld [vmem:[#allocation6 + $0x558] sm:$0xff]  }
  0xa2   :  { %2725 = vmatprep.subr.bf16.mxu1 %v2995_v15  ;;  %v3055_v15 = vld [vmem:[#allocation6 + $0x5d8] sm:$0xff]  }
  0xa4   :  { %2704 = vmatpush3.bf16.msra.mxu0 %v2996_v16  ;;  %v3056_v16 = vld [vmem:[#allocation6 + $0x518] sm:$0xff]  }
  0xa5   :  { %2726 = vmatpush3.bf16.msra.mxu1 %v2997_v17  ;;  %2733 = vmatprep.subr.bf16.mxu0 %v3002_v23  ;;  %v3057_v17 = vld [vmem:[#allocation6 + $0x598] sm:$0xff]   ;;  %v3063_v23 = vld [vmem:[#allocation6 + $0x5c8] sm:$0xff]  }
  0xa6   :  { %2755 = vmatprep.subr.bf16.mxu1 %v3003_v25  ;;  %v3065_v25 = vld [vmem:[#allocation6 + $0x588] sm:$0xff]  }
  0xa7   :  { %1985 = vmatmul.mubr.bf16.vlgmr.msra.gmra.mxu0 %v2345_v20  ;;  %v3060_v20 = vld [vmem:[#allocation6 + $0x510] sm:$0xff]  }
  0xa8   :  { %2025 = vmatmul.mubr.bf16.vlgmr.msra.gmra.mxu1 %v2347_v22  ;;  %2734 = vmatpush3.bf16.msra.mxu0 %v3004_v26  ;;  %v3062_v22 = vld [vmem:[#allocation6 + $0x548] sm:$0xff]   ;;  %v3066_v26 = vld [vmem:[#allocation6 + $0x540] sm:$0xff]  }
  0xa9   :  { %2756 = vmatpush3.bf16.msra.mxu1 %v3005_v27  ;;  %2735 = vmatprep.subr.bf16.mxu0 %v3006_v28  ;;  %v3067_v27 = vld [vmem:[#allocation6 + $0x5c0] sm:$0xff]  }
  0xaa   :  { %2757 = vmatprep.subr.bf16.mxu1 %v3007_v29  ;;  %2064 = vmatprep.mubr.bf16.mxu0 %v2350_v58  ;;  %v3068_v28 = vld [vmem:[#allocation6 + $0x500] sm:$0xff]  }
  0xab   :  { %2104 = vmatprep.mubr.bf16.mxu1 %v2352_v61  ;;  %v3069_v29 = vld [vmem:[#allocation6 + $0x580] sm:$0xff]   ;;  %v3079_v61 = vld [vmem:[#allocation8 + $0x10] sm:$0xff]  }
  0xac   :  { %2736 = vmatpush3.bf16.msra.mxu0 %v3008_v30  ;;  %v83_v30 = vld [vmem:[#allocation3 + $0x50] sm:$0xff] }
  0xad   :  { %2758 = vmatpush3.bf16.msra.mxu1 %v3009_v31  ;;  %2737 = vmatprep.subr.bf16.mxu0 %v3010_v32  ;;  %v84_v31 = vld [vmem:[#allocation3 + $0x58] sm:$0xff]  ;;  %v2353_v32 = vcombine.low %v83_v30, %v83_v30 }
  0xae   :  { %2759 = vmatprep.subr.bf16.mxu1 %v3011_v33  ;;  %v2354_v33 = vcombine.high %v83_v30, %v83_v30 }
  0xb0   :  { %2738 = vmatpush3.bf16.msra.mxu0 %v3012_v34  ;;  %v2355_v34 = vcombine.low %v84_v31, %v84_v31 }
  0xb1   :  { %2760 = vmatpush3.bf16.msra.mxu1 %v3013_v35  ;;  %2739 = vmatprep.subr.bf16.mxu0 %v3014_v36  ;;  %v2356_v35 = vcombine.high %v84_v31, %v84_v31 }
  0xb2   :  { %2761 = vmatprep.subr.bf16.mxu1 %v3015_v37 }
  0xb4   :  { %2740 = vmatpush3.bf16.msra.mxu0 %v3016_v38  ;;  %v2332_v38 = vld [vmem:[%s3230_s2] ss:$0 sm:$0xff] }
  0xb5   :  { %2762 = vmatpush3.bf16.msra.mxu1 %v3017_v39  ;;  %2741 = vmatprep.subr.bf16.mxu0 %v3018_v40 }
  0xb6   :  { %2763 = vmatprep.subr.bf16.mxu1 %v3019_v41 }
  0xb8   :  { %2742 = vmatpush3.bf16.msra.mxu0 %v3020_v42 }
  0xb9   :  { %2764 = vmatpush3.bf16.msra.mxu1 %v3021_v43  ;;  %2743 = vmatprep.subr.bf16.mxu0 %v3022_v44 }
  0xba   :  { %2765 = vmatprep.subr.bf16.mxu1 %v3023_v45 }
  0xbc   :  { %2744 = vmatpush3.bf16.msra.mxu0 %v3024_v46 }
  0xbd   :  { %2766 = vmatpush3.bf16.msra.mxu1 %v3025_v47  ;;  %2745 = vmatprep.subr.bf16.mxu0 %v3026_v48 }
  0xbe   :  { %2767 = vmatprep.subr.bf16.mxu1 %v3027_v49  ;;  %v3074_v49 = vld [vmem:[#allocation8 + $0x38] sm:$0xff]  }
  0xc0   :  { %2746 = vmatpush3.bf16.msra.mxu0 %v3028_v50  ;;  %v3177_v50 = vmov 0.0  }
  0xc1   :  { %2768 = vmatpush3.bf16.msra.mxu1 %v3029_v51  ;;  %2747 = vmatprep.subr.bf16.mxu0 %v3030_v52  ;;  %v3075_v51 = vld [vmem:[#allocation8 + $0x30] sm:$0xff]   ;;  %v3076_v52 = vld [vmem:[#allocation8 + $0x28] sm:$0xff]  }
  0xc2   :  { %2769 = vmatprep.subr.bf16.mxu1 %v3031_v53  ;;  %v3077_v53 = vld [vmem:[#allocation8 + $0x20] sm:$0xff]  }
  0xc4   :  { %2748 = vmatpush3.bf16.msra.mxu0 %v3032_v54  ;;  %v3078_v54 = vld [vmem:[#allocation8 + $0x18] sm:$0xff]  }
  0xc5   :  { %2770 = vmatpush3.bf16.msra.mxu1 %v3033_v55  ;;  %2777 = vmatprep.subr.bf16.mxu0 %v3038_v62 }
  0xc6   :  { %2799 = vmatprep.subr.bf16.mxu1 %v3039_v63 }
  0xc7   :  { %2065 = vmatmul.mubr.bf16.vlgmr.msra.gmra.mxu0 %v2349_v57 }
  0xc8   :  { %2105 = vmatmul.mubr.bf16.vlgmr.msra.gmra.mxu1 %v2351_v60  ;;  %2778 = vmatpush3.bf16.msra.mxu0 %v3040_v0 }
  0xc9   :  { %2800 = vmatpush3.bf16.msra.mxu1 %v3041_v1  ;;  %2779 = vmatprep.subr.bf16.mxu0 %v3042_v2 }
  0xca   :  { %2801 = vmatprep.subr.bf16.mxu1 %v3043_v3  ;;  %2144 = vmatprep.mubr.bf16.mxu0 %v2354_v33 }
  0xcb   :  { %2184 = vmatprep.mubr.bf16.mxu1 %v2356_v35 }
  0xcc   :  { %2780 = vmatpush3.bf16.msra.mxu0 %v3044_v4  ;;  %v3080_v4 = vld [vmem:[#allocation8 + $0x8] sm:$0xff]  }
  0xcd   :  { %2802 = vmatpush3.bf16.msra.mxu1 %v3045_v5  ;;  %2781 = vmatprep.subr.bf16.mxu0 %v3046_v6  ;;  %v3081_v5 = vld [vmem:[#allocation8] sm:$0xff]  }
  0xce   :  { %2803 = vmatprep.subr.bf16.mxu1 %v3047_v7 }
  0xd0   :  { %2782 = vmatpush3.bf16.msra.mxu0 %v3048_v8 }
  0xd1   :  { %2804 = vmatpush3.bf16.msra.mxu1 %v3049_v9  ;;  %2783 = vmatprep.subr.bf16.mxu0 %v3050_v10 }
  0xd2   :  { %2805 = vmatprep.subr.bf16.mxu1 %v3051_v11 }
  0xd4   :  { %2784 = vmatpush3.bf16.msra.mxu0 %v3052_v12 }
  0xd5   :  { %2806 = vmatpush3.bf16.msra.mxu1 %v3053_v13  ;;  %2785 = vmatprep.subr.bf16.mxu0 %v3054_v14 }
  0xd6   :  { %2807 = vmatprep.subr.bf16.mxu1 %v3055_v15 }
  0xd8   :  { %2786 = vmatpush3.bf16.msra.mxu0 %v3056_v16 }
  0xd9   :  { %2808 = vmatpush3.bf16.msra.mxu1 %v3057_v17  ;;  %2787 = vmatprep.subr.bf16.mxu0 %v3058_v18 }
  0xda   :  { %2809 = vmatprep.subr.bf16.mxu1 %v3059_v19 }
  0xdc   :  { %2788 = vmatpush3.bf16.msra.mxu0 %v3060_v20 }
  0xdd   :  { %2810 = vmatpush3.bf16.msra.mxu1 %v3061_v21  ;;  %2789 = vmatprep.subr.bf16.mxu0 %v3062_v22 }
  0xde   :  { %2811 = vmatprep.subr.bf16.mxu1 %v3063_v23 }
  0xe0   :  { %2790 = vmatpush3.bf16.msra.mxu0 %v3064_v24 }
  0xe1   :  { %2812 = vmatpush3.bf16.msra.mxu1 %v3065_v25  ;;  %2791 = vmatprep.subr.bf16.mxu0 %v3066_v26 }
  0xe2   :  { %2813 = vmatprep.subr.bf16.mxu1 %v3067_v27 }
  0xe4   :  { %2792 = vmatpush3.bf16.msra.mxu0 %v3068_v28 }
  0xe5   :  { %2814 = vmatpush3.bf16.msra.mxu1 %v3069_v29  ;;  %2830 = vmatprep.subr.bf16.mxu0 %v3177_v50 }
  0xe7   :  { %2145 = vmatmul.mubr.bf16.vlgmr.msra.gmra.mxu0 %v2353_v32 }
  0xe8   :  { %2185 = vmatmul.mubr.bf16.vlgmr.msra.gmra.mxu1 %v2355_v34  ;;  %2831 = vmatpush3.bf16.msra.mxu0 %v3074_v49 }
  0xe9   :  { %2832 = vmatprep.subr.bf16.mxu0 %v3177_v50  ;;  %2846 = vmatprep.mubr.msk.bf16.mxu0 %vm3178_vm0, %v3177_v50 }
  0xec   :  { %2833 = vmatpush3.bf16.msra.mxu0 %v3075_v51 }
  0xed   :  { %2834 = vmatprep.subr.bf16.mxu0 %v3177_v50 }
  0xf0   :  { %2835 = vmatpush3.bf16.msra.mxu0 %v3076_v52 }
  0xf1   :  { %2836 = vmatprep.subr.bf16.mxu0 %v3177_v50 }
  0xf4   :  { %2837 = vmatpush3.bf16.msra.mxu0 %v3077_v53 }
  0xf5   :  { %2838 = vmatprep.subr.bf16.mxu0 %v3177_v50 }
  0xf8   :  { %2839 = vmatpush3.bf16.msra.mxu0 %v3078_v54 }
  0xf9   :  { %2840 = vmatprep.subr.bf16.mxu0 %v3177_v50 }
  0xfc   :  { %2841 = vmatpush3.bf16.msra.mxu0 %v3079_v61 }
  0xfd   :  { %2842 = vmatprep.subr.bf16.mxu0 %v3177_v50 }
 0x100   :  { %2843 = vmatpush3.bf16.msra.mxu0 %v3080_v4 }
 0x101   :  { %2844 = vmatprep.subr.bf16.mxu0 %v3177_v50 }
 0x104   :  { %2845 = vmatpush3.bf16.msra.mxu0 %v3081_v5 }
 0x107   :  { %v2573_v36 = vpop.f32.mrf.mxu0 }
 0x108   :  { %v2595_v37 = vpop.f32.mrf.mxu1 }
 0x109   :  { %v2574_v39 = vpop.f32.mrf.mxu0 }
 0x10a   :  { %v2596_v40 = vpop.f32.mrf.mxu1  ;;  %v2575_v41 = vadd.f32 %v2574_v39, %v2573_v36 }
 0x10b   :  { %v2597_v42 = vadd.f32 %v2596_v40, %v2595_v37  ;;  %v2576_v43 = vpop.f32.mrf.mxu0 }
 0x10c   :  { %v2598_v44 = vpop.f32.mrf.mxu1  ;;  %v1747_v45 = vadd.f32 %v2575_v41, %v2332_v38 }
 0x10d   :  { %v2577_v46 = vpop.f32.mrf.mxu0 }
 0x10e   :  { %v2599_v47 = vpop.f32.mrf.mxu1  ;;  %v1787_v48 = vadd.f32 %v2597_v42, %v1747_v45 }
 0x127   :  { %v2617_v55 = vpop.f32.mrf.mxu0 }
 0x128   :  { %v2639_v56 = vpop.f32.mrf.mxu1 }
 0x129   :  { %v2618_v57 = vpop.f32.mrf.mxu0 }
 0x12a   :  { %v2640_v58 = vpop.f32.mrf.mxu1  ;;  %v2619_v59 = vadd.f32 %v2618_v57, %v2617_v55 }
 0x12b   :  { %v2641_v60 = vadd.f32 %v2640_v58, %v2639_v56  ;;  %v2620_v62 = vpop.f32.mrf.mxu0  ;;  %v2331_v56 = vld [vmem:[%s3232_s4] ss:$0 sm:$0xff]  ;;  %s3146_s4 = scalar_lea.vmem %s2322_s11, 128 }
 0x12c   :  { %v2642_v63 = vpop.f32.mrf.mxu1  ;;  %v1827_v0 = vadd.f32 %v2619_v59, %v1787_v48  ;;  %p3147_p1 = scmp.ne.s32.totalorder %s2322_s11, %s3146_s4  ;;  %p3152_p3 = scmp.lt.s32.totalorder %s3146_s4, %s3146_s4 }
 0x12d   :  { %v2621_v1 = vpop.f32.mrf.mxu0 }
 0x12e   :  { %v2643_v2 = vpop.f32.mrf.mxu1  ;;  %v1867_v3 = vadd.f32 %v2641_v60, %v1827_v0  ;;  %p3153_p4 = por %p3152_p3, %p3151_p2 }
 0x130   :  { %p3154_p5 = pnand %p3153_p4, %p3147_p1 }
 0x147   :  { %v2661_v6 = vpop.f32.mrf.mxu0 }
 0x148   :  { %v2683_v7 = vpop.f32.mrf.mxu1 }
 0x149   :  { %v2662_v8 = vpop.f32.mrf.mxu0 }
 0x14a   :  { %v2663_v9 = vadd.f32 %v2662_v8, %v2661_v6  ;;  %v2684_v10 = vpop.f32.mrf.mxu1 }
 0x14b   :  { %v2685_v11 = vadd.f32 %v2684_v10, %v2683_v7  ;;  %v2664_v12 = vpop.f32.mrf.mxu0 }
 0x14c   :  { %v1907_v13 = vadd.f32 %v2663_v9, %v1867_v3  ;;  %v2686_v14 = vpop.f32.mrf.mxu1 }
 0x14d   :  { %v2665_v15 = vpop.f32.mrf.mxu0 }
 0x14e   :  { %v1947_v16 = vadd.f32 %v2685_v11, %v1907_v13  ;;  %v2687_v17 = vpop.f32.mrf.mxu1 }
 0x167   :  { %v2705_v18 = vpop.f32.mrf.mxu0 }
 0x168   :  { %v2727_v19 = vpop.f32.mrf.mxu1 }
 0x169   :  { %v2706_v20 = vpop.f32.mrf.mxu0 }
 0x16a   :  { %v2728_v21 = vpop.f32.mrf.mxu1  ;;  %v2707_v34 = vadd.f32 %v2706_v20, %v2705_v18 }
 0x16b   :  { %v2708_v22 = vpop.f32.mrf.mxu0  ;;  %v2729_v36 = vadd.f32 %v2728_v21, %v2727_v19 }
 0x16c   :  { %v2730_v23 = vpop.f32.mrf.mxu1  ;;  %v1987_v35 = vadd.f32 %v2707_v34, %v1947_v16 }
 0x16d   :  { %v2709_v24 = vpop.f32.mrf.mxu0 }
 0x16e   :  { %v2731_v25 = vpop.f32.mrf.mxu1  ;;  %v2027_v38 = vadd.f32 %v2729_v36, %v1987_v35 }
 0x187   :  { %v2749_v26 = vpop.f32.mrf.mxu0 }
 0x188   :  { %v2771_v27 = vpop.f32.mrf.mxu1 }
 0x189   :  { %v2750_v28 = vpop.f32.mrf.mxu0 }
 0x18a   :  { %v2772_v29 = vpop.f32.mrf.mxu1  ;;  %v2751_v37 = vadd.f32 %v2750_v28, %v2749_v26 }
 0x18b   :  { %v2752_v30 = vpop.f32.mrf.mxu0  ;;  %v2773_v40 = vadd.f32 %v2772_v29, %v2771_v27 }
 0x18c   :  { %v2774_v31 = vpop.f32.mrf.mxu1  ;;  %v2067_v39 = vadd.f32 %v2751_v37, %v2027_v38 }
 0x18d   :  { %v2753_v32 = vpop.f32.mrf.mxu0 }
 0x18e   :  { %v2775_v33 = vpop.f32.mrf.mxu1  ;;  %v2107_v44 = vadd.f32 %v2773_v40, %v2067_v39 }
 0x1a7   :  { %v2793_v41 = vpop.f32.mrf.mxu0 }
 0x1a8   :  { %v2815_v42 = vpop.f32.mrf.mxu1 }
 0x1a9   :  { %v2794_v43 = vpop.f32.mrf.mxu0 }
 0x1aa   :  { %v2795_v45 = vadd.f32 %v2794_v43, %v2793_v41  ;;  %v2816_v46 = vpop.f32.mrf.mxu1 }
 0x1ab   :  { %v2796_v47 = vpop.f32.mrf.mxu0  ;;  %v2817_v49 = vadd.f32 %v2816_v46, %v2815_v42 }
 0x1ac   :  { %v2147_v48 = vadd.f32 %v2795_v45, %v2107_v44  ;;  %v2818_v50 = vpop.f32.mrf.mxu1 }
 0x1ad   :  { %v2797_v51 = vpop.f32.mrf.mxu0 }
 0x1ae   :  { %v2187_v52 = vadd.f32 %v2817_v49, %v2147_v48  ;;  %v2819_v53 = vpop.f32.mrf.mxu1 }
 0x1b0   :  { %v2192_v54 = vmax.f32 %v2187_v52, 0.0 }
 0x1b2   :  { %v2194_v55 = vpack.c.bf16 %v2192_v54, %v2192_v54 }
 0x1b4   :  { %2847 = vmatmul.mubr.bf16.vlgmr.msra.gmra.mxu0 %v2194_v55 }
 0x274   :  { %v2293_v57 = vpop.f32.mrf.mxu0 }
 0x275   :  { %v2299_v58 = vadd.f32 %v2331_v56, %v2293_v57 }
 0x276   :  { %v2848_v59 = vpop.f32.mrf.mxu0 }
 0x277   :  { %2305 = vmax.xlane.f32.xlu0 %v2299_v58 }
 0x278   :  { %v2296_v60 = vpop.f32.mrf.mxu0 }
 0x27a   :  { %v2849_v61 = vpop.f32.mrf.mxu0 }
 0x300   :  { %v2306_v62 = vpop.xlane.xlu0 %2305 }
 0x301   :  { %v2307_v63 = vsub.f32 %v2299_v58, %v2306_v62 }
 0x303   :  { %v2308_v0 = vmul.f32 1.442695, %v2307_v63 }
 0x305   :  { %3082 = vpow2.f32 %v2308_v0 }
 0x312   :  { %v3083_v1 = vpop.eup %3082 }
 0x313   :  { %2310 = vadd.xlane.f32.xlu0 %v3083_v1 }
 0x39c   :  { %v2311_v2 = vpop.xlane.xlu0 %2310 }
 0x39d   :  { %3084 = vrcp.f32 %v2311_v2 }
 0x3aa   :  { %v3085_v3 = vpop.eup %3084 }
 0x3ab   :  { %v2313_v4 = vmul.f32 %v3085_v3, %v3083_v1 }
 0x3ad   :  { %2314 = vst [vmem:[#allocation9] sm:$0xff] %v2313_v4 }
 0x3ae   :  { %3157 = shalt.err (!%p3154_p5)
}
 0x3af   :  { %2324 = dma.vmem_to_hbm [thread:$0]  %s2322_s11, 128, %s3233_s5, [#allocation5]  }
 0x3b0   :  { %3170 = dma.done.wait [#allocation5], 128  }
 0x3b1   :  { %3171 = vsyncadd [#allocation5], 4294967168 }
 0x3b2   :  { %2328 = vsyncpa [#allocation4], 1 }
 0x3b3   :  { %2329 = vsyncpa [#allocation7], 1 }
 0x3b4   :  { %2330 = vsyncpa [#allocation5], 1 }

</bundles_post_ra>
